<compile_context>
chip_gen: v7x
topology: tpu7x:2x2x1
jax: 0.10.0
libtpu: 0.0.40
codegen_flags: <defaults>
</compile_context>

<pallas_src>
import jax
import jax.numpy as jnp
from jax.experimental import pallas as pl
from jax.experimental.pallas import tpu as pltpu

CHANNELS = ['t850', 'z1000', 'z700', 'z500', 'z300', 'tcwv', 't2m']

# ---- small, shape-consistent stand-ins for 721x1440 lat-lon / 6x64x64 cubed-sphere ----
NLAT, NLON = 16, 32            # lat-lon grid
FACES, HC, WC = 6, 8, 8        # cubed-sphere grid
N_LL = NLAT * NLON             # 512  (lane-dense: multiple of 128)
N_CS = FACES * HC * WC         # 384  (lane-dense: multiple of 128)
N_CHAN = len(CHANNELS)         # 7
T_IN = 2                       # input time steps


# ------------------------------ fused Pallas kernel ------------------------------

def _dlwp_fused_kernel(x_ref, min_ref, ex_ref, wx_ref, we_ref, mout_ref, o_ref):
    """Fused (ll->cs remap) -> (1x1-conv channel mix) -> (cs->ll remap).

    x_ref:    (bs*t*chan, N_LL)      bf16  flattened lat-lon input fields
    min_ref:  (N_LL, N_CS)           bf16  ll->cs map (transposed), dense stand-in
    ex_ref:   (t+3, N_CS)            bf16  batch-shared extras [tisr_0..tisr_{t-1}, lsm, topo, 1]
    wx_ref:   (bs*C_out, bs*t*chan)  bf16  block-diag weight columns hitting remapped vars
    we_ref:   (bs*C_out, t+3)        bf16  weight columns hitting extras (+ bias column)
    mout_ref: (N_CS, N_LL)           bf16  cs->ll map (transposed), dense stand-in
    o_ref:    (bs*C_out, N_LL)       f32

    Everything stays resident in VMEM/vregs for the whole kernel; no HBM intermediates.
    """
    # (1) lat-lon -> cubed-sphere remap: all bs*t*chan rows in one MXU matmul.
    x_cs = jnp.dot(x_ref[...], min_ref[...],
                   preferred_element_type=jnp.float32)                 # (R_in, N_CS) f32

    # (2) DLWP core stand-in: per-batch 1x1 conv expressed as ONE block-diagonal
    #     channel-mix matmul (exact; bf16 zeros stay zero, so no cross-batch leakage).
    y = jnp.dot(wx_ref[...], x_cs.astype(jnp.bfloat16),
                preferred_element_type=jnp.float32)                    # (R_out, N_CS) f32
    #     Batch-shared extras + bias (bias rides on the trailing "ones" row of ex_ref).
    y = y + jnp.dot(we_ref[...], ex_ref[...],
                    preferred_element_type=jnp.float32)

    # (3) cubed-sphere -> lat-lon remap.
    o_ref[...] = jnp.dot(y.astype(jnp.bfloat16), mout_ref[...],
                         preferred_element_type=jnp.float32)           # (R_out, N_LL) f32


def dlwp_fused(x_flat, m_in_t, extras, wx_bd, we_aug, m_out_t):
    """Single pallas_call running the whole forward; the full problem fits VMEM."""
    r_in, n_ll = x_flat.shape
    n_cs = m_in_t.shape[1]
    r_out = wx_bd.shape[0]
    n_ex = extras.shape[0]

    flops = 2 * (r_in * n_ll * n_cs          # ll->cs remap
                 + r_out * r_in * n_cs       # block-diag channel mix
                 + r_out * n_ex * n_cs       # extras + bias
                 + r_out * n_cs * n_ll)      # cs->ll remap
    bytes_accessed = sum(int(a.size) * a.dtype.itemsize
                         for a in (x_flat, m_in_t, extras, wx_bd, we_aug, m_out_t))
    bytes_accessed += r_out * n_ll * 4       # f32 output

    # TODO(synk): at real scale (N_LL=721*1440, N_CS=6*64*64) the remap maps are sparse COO;
    # a dense single-block matmul neither fits VMEM nor scales. That version needs a tiled
    # K-accumulator grid (parallel, parallel, arbitrary) or a scalar-prefetch SpMM, with tile
    # sizes budgeted per generation (v7x: 64 MiB physical / 32 MiB scoped-default VMEM).
    return pl.pallas_call(
        _dlwp_fused_kernel,
        out_shape=jax.ShapeDtypeStruct((r_out, n_ll), jnp.float32),
        grid=(1,),
        in_specs=[pl.BlockSpec(x_flat.shape, lambda i: (0, 0)),
                  pl.BlockSpec(m_in_t.shape, lambda i: (0, 0)),
                  pl.BlockSpec(extras.shape, lambda i: (0, 0)),
                  pl.BlockSpec(wx_bd.shape, lambda i: (0, 0)),
                  pl.BlockSpec(we_aug.shape, lambda i: (0, 0)),
                  pl.BlockSpec(m_out_t.shape, lambda i: (0, 0))],
        out_specs=pl.BlockSpec((r_out, n_ll), lambda i: (0, 0)),
        compiler_params=pltpu.CompilerParams(
            dimension_semantics=("arbitrary",)),
        cost_estimate=pl.CostEstimate(flops=flops, transcendentals=0,
                                      bytes_accessed=bytes_accessed),
    )(x_flat, m_in_t, extras, wx_bd, we_aug, m_out_t)


# ------------------------------ plain-JAX glue ------------------------------

def cos_zenith_angle(hours, lon_deg, lat_deg):
    # TODO(synk): simplified solar geometry stand-in for earth2mip's astronomical
    # cos_zenith_angle (which the reference computes in numpy on CPU anyway).
    doy = hours / 24.0
    decl = (23.44 * jnp.pi / 180.0) * jnp.sin(2.0 * jnp.pi * (doy - 81.0) / 365.0)
    hour_utc = jnp.mod(hours, 24.0)
    lat = lat_deg * jnp.pi / 180.0
    lon = lon_deg * jnp.pi / 180.0
    ha = (2.0 * jnp.pi / 24.0) * (hour_utc - 12.0) + lon
    return jnp.sin(lat) * jnp.sin(decl) + jnp.cos(lat) * jnp.cos(decl) * jnp.cos(ha)


def _pack_model_weights(w, b, bs, t, chan):
    """Split the 1x1-conv weight into [remapped-var | extra-channel] column groups.

    Input-channel order of the reference model: for each time step t_i the 7 remapped
    vars then TISR, followed by lsm and topo  ->  columns [0..6, 8..14] are 'x' columns,
    columns [7, 15, 16, 17] are 'extra' columns (t=2).

    The per-batch conv over the remapped vars is lifted to ONE block-diagonal matmul
    (exact).  The extras are batch-independent, so their weight rows are simply tiled and
    the bias is appended as a column that multiplies the trailing "ones" extras row."""
    c_out = w.shape[0]
    w_t = w[:, :t * (chan + 1)].reshape(c_out, t, chan + 1)
    w_x = w_t[:, :, :chan].reshape(c_out, t * chan)                 # remapped-var columns
    w_e = jnp.concatenate([w_t[:, :, chan],                         # per-step TISR columns
                           w[:, t * (chan + 1):]], axis=1)          # lsm, topo columns
    eye = jnp.eye(bs, dtype=jnp.bfloat16)
    wx_bd = jnp.kron(eye, w_x.astype(jnp.bfloat16))                 # (bs*c_out, bs*t*chan)
    we_aug = jnp.concatenate([jnp.tile(w_e, (bs, 1)),               # (bs*c_out, t+2)
                              jnp.tile(b, (bs, 1))], axis=1)        # + bias column
    return wx_bd, we_aug.astype(jnp.bfloat16)


def forward(x, time_hours, params):
    """x: (bs, t, chan, NLAT, NLON), time in hours -> (bs, 2, chan, NLAT, NLON)."""
    bs, t, chan = x.shape[0], x.shape[1], x.shape[2]

    # TISR for all t time steps in one vectorized evaluation (no per-step concat loop).
    hrs = time_hours - 6.0 * (t - 1) + 6.0 * jnp.arange(t, dtype=jnp.float32)
    cz = cos_zenith_angle(hrs[:, None, None, None],
                          params["longrid"], params["latgrid"])      # (t, F, HC, WC)
    tisr = jnp.maximum(cz, 0.0) - 1.0 / jnp.pi

    topo = (params["topographic_height"] - 3724.0) / 8349.0
    extras = jnp.concatenate([tisr.reshape(t, N_CS),
                              params["lsm"].reshape(1, N_CS),
                              topo.reshape(1, N_CS),
                              jnp.ones((1, N_CS), jnp.float32)],     # bias row
                             axis=0).astype(jnp.bfloat16)            # (t+3, N_CS)

    wx_bd, we_aug = _pack_model_weights(params["w"], params["b"], bs, t, chan)

    x_flat = x.reshape(bs * t * chan, N_LL).astype(jnp.bfloat16)
    out = dlwp_fused(x_flat, params["M_in_T"], extras, wx_bd, we_aug,
                     params["M_out_T"])                               # (bs*2*chan, N_LL)

    # Row order is (batch, out_channel) with out_channel = half*chan + c, which matches
    # torch.split(output, c_out//2, dim=1) -> torch.stack(dim=1) of the reference.
    return out.reshape(bs, 2, chan, NLAT, NLON)


def reference_forward(x, time_hours, params):
    """Pure-JAX f32 reference mirroring the PyTorch module's forward (same dense
    stand-ins for the sparse remap maps and the same 1x1-conv core)."""
    bs, t, chan = x.shape[0], x.shape[1], x.shape[2]
    m_in, m_out = params["M_in_f32"], params["M_out_f32"]

    x_cs = (x.reshape(bs * t * chan, N_LL) @ m_in.T).reshape(bs, t, chan, FACES, HC, WC)
    pieces = []
    for i in range(t):
        hrs = time_hours - 6.0 * (t - 1) + 6.0 * i
        tisr = jnp.maximum(cos_zenith_angle(hrs, params["longrid"], params["latgrid"]),
                           0.0) - 1.0 / jnp.pi
        tisr = jnp.broadcast_to(tisr[None, None], (bs, 1, FACES, HC, WC))
        pieces.append(jnp.concatenate([x_cs[:, i], tisr], axis=1))
    inp = jnp.concatenate(pieces, axis=1)
    lsm = jnp.broadcast_to(params["lsm"][None], (bs,) + params["lsm"].shape)
    topo = (params["topographic_height"] - 3724.0) / 8349.0
    topo = jnp.broadcast_to(topo[None], (bs,) + topo.shape)
    inp = jnp.concatenate([inp, lsm, topo], axis=1)                   # (bs, 18, F, HC, WC)

    y = jnp.einsum('oc,bcp->bop', params["w"],
                   inp.reshape(bs, inp.shape[1], N_CS)) + params["b"][None]
    out = y.reshape(bs * y.shape[1], N_CS) @ m_out.T
    return out.reshape(bs, 2, chan, NLAT, NLON)


# ------------------------------ main ------------------------------

if __name__ == "__main__":
    key = jax.random.PRNGKey(0)
    k = jax.random.split(key, 8)
    bs = 2

    # input: (batch, time, channel, lat, lon)
    x = jax.random.normal(k[0], (bs, T_IN, N_CHAN, NLAT, NLON), jnp.float32)

    # deterministic dense, row-normalized stand-ins for the sparse remap matrices
    # TODO(synk): the real ll_to_cs / cs_to_ll maps are sparse COO read from map files.
    M_in = jax.random.uniform(k[1], (N_CS, N_LL), jnp.float32)
    M_in = M_in / jnp.sum(M_in, axis=1, keepdims=True)
    M_out = jax.random.uniform(k[2], (N_LL, N_CS), jnp.float32)
    M_out = M_out / jnp.sum(M_out, axis=1, keepdims=True)

    lat1d = jnp.linspace(-80.0, 80.0, HC)
    lon1d = jnp.linspace(0.0, 360.0, WC, endpoint=False)
    latgrid = jnp.broadcast_to(lat1d[None, :, None], (FACES, HC, WC))
    longrid = (jnp.broadcast_to(lon1d[None, None, :], (FACES, HC, WC))
               + 15.0 * jnp.arange(FACES, dtype=jnp.float32)[:, None, None])

    lsm = (jax.random.uniform(k[3], (1, FACES, HC, WC)) > 0.5).astype(jnp.float32)
    topo = jax.random.uniform(k[4], (1, FACES, HC, WC), jnp.float32) * 5000.0

    # stand-in DLWP core: 1x1 conv (channel mixing) over the 18-channel cubed-sphere input
    # TODO(synk): the real `self.model` is the external modulus DLWP CNN.
    c_in = T_IN * (N_CHAN + 1) + 2      # 7 vars + tisr per step, + lsm + topo = 18
    c_out = 2 * N_CHAN                  # 2 output time steps x 7 channels = 14
    w = 0.1 * jax.random.normal(k[5], (c_out, c_in), jnp.float32)
    b = 0.01 * jax.random.normal(k[6], (c_out, 1), jnp.float32)

    params = dict(
        # bf16 MXU operands (f32 accumulation happens inside the kernel)
        M_in_T=M_in.T.astype(jnp.bfloat16),
        M_out_T=M_out.T.astype(jnp.bfloat16),
        # f32 copies only used by the pure-JAX reference check
        M_in_f32=M_in, M_out_f32=M_out,
        longrid=longrid, latgrid=latgrid,
        lsm=lsm, topographic_height=topo, w=w, b=b)

    time_hours = jnp.float32(1932.0)    # "time" as hours since an epoch (datetime stand-in)

    out = jax.jit(forward)(x, time_hours, params)
    jax.block_until_ready(out)
    assert out.shape == (bs, 2, N_CHAN, NLAT, NLON), out.shape
    assert out.dtype == jnp.float32

    # correctness vs. the pure-JAX f32 reference (loose tolerance for the bf16 operands)
    ref = reference_forward(x, time_hours, params)
    assert jnp.allclose(out, ref, rtol=5e-2, atol=2e-2), float(jnp.max(jnp.abs(out - ref)))

    print("KERNEL_OK")
</pallas_src>

<mosaic_0001>
module attributes {stable_mosaic.version = 11 : i64} {
  func.func @_dlwp_fused_kernel(%arg0: i32, %arg1: memref<28x512xbf16, #tpu.memory_space<vmem>>, %arg2: memref<512x384xbf16, #tpu.memory_space<vmem>>, %arg3: memref<5x384xbf16, #tpu.memory_space<vmem>>, %arg4: memref<28x28xbf16, #tpu.memory_space<vmem>>, %arg5: memref<28x5xbf16, #tpu.memory_space<vmem>>, %arg6: memref<384x512xbf16, #tpu.memory_space<vmem>>, %arg7: memref<28x512xf32, #tpu.memory_space<vmem>>) attributes {dimension_semantics = [#tpu.dimension_semantics<arbitrary>], iteration_bounds = array<i64: 1>, scalar_prefetch = 0 : i64, scratch_operands = 0 : i64, tpu.core_type = #tpu.core_type<tc>, window_params = [{pipeline_mode = #tpu.pipeline_mode<synchronous>, transform_indices = @transform_0, window_bounds = array<i64: 28, 512>}, {pipeline_mode = #tpu.pipeline_mode<synchronous>, transform_indices = @transform_1, window_bounds = array<i64: 512, 384>}, {pipeline_mode = #tpu.pipeline_mode<synchronous>, transform_indices = @transform_2, window_bounds = array<i64: 5, 384>}, {pipeline_mode = #tpu.pipeline_mode<synchronous>, transform_indices = @transform_3, window_bounds = array<i64: 28, 28>}, {pipeline_mode = #tpu.pipeline_mode<synchronous>, transform_indices = @transform_4, window_bounds = array<i64: 28, 5>}, {pipeline_mode = #tpu.pipeline_mode<synchronous>, transform_indices = @transform_5, window_bounds = array<i64: 384, 512>}, {pipeline_mode = #tpu.pipeline_mode<synchronous>, transform_indices = @transform_6, window_bounds = array<i64: 28, 512>}]} {
    %c0 = arith.constant 0 : index
    %c0_0 = arith.constant 0 : index
    %0 = vector.load %arg1[%c0, %c0_0] : memref<28x512xbf16, #tpu.memory_space<vmem>>, vector<28x512xbf16>
    %c0_1 = arith.constant 0 : index
    %c0_2 = arith.constant 0 : index
    %1 = vector.load %arg2[%c0_1, %c0_2] : memref<512x384xbf16, #tpu.memory_space<vmem>>, vector<512x384xbf16>
    %cst = arith.constant dense<0.000000e+00> : vector<28x384xf32>
    %2 = tpu.matmul %0, %1, %cst {dimension_numbers = #tpu.dot_dimension_numbers<[1], [0], [0], [1], [0, 0, 1, 1], [], []>} : vector<28x512xbf16>, vector<512x384xbf16>, vector<28x384xf32> -> vector<28x384xf32>
    %c0_3 = arith.constant 0 : index
    %c0_4 = arith.constant 0 : index
    %3 = vector.load %arg4[%c0_3, %c0_4] : memref<28x28xbf16, #tpu.memory_space<vmem>>, vector<28x28xbf16>
    %4 = arith.truncf %2 : vector<28x384xf32> to vector<28x384xbf16>
    %cst_5 = arith.constant dense<0.000000e+00> : vector<28x384xf32>
    %5 = tpu.matmul %3, %4, %cst_5 {dimension_numbers = #tpu.dot_dimension_numbers<[1], [0], [0], [1], [0, 0, 1, 1], [], []>} : vector<28x28xbf16>, vector<28x384xbf16>, vector<28x384xf32> -> vector<28x384xf32>
    %c0_6 = arith.constant 0 : index
    %c0_7 = arith.constant 0 : index
    %6 = vector.load %arg5[%c0_6, %c0_7] : memref<28x5xbf16, #tpu.memory_space<vmem>>, vector<28x5xbf16>
    %c0_8 = arith.constant 0 : index
    %c0_9 = arith.constant 0 : index
    %7 = vector.load %arg3[%c0_8, %c0_9] : memref<5x384xbf16, #tpu.memory_space<vmem>>, vector<5x384xbf16>
    %cst_10 = arith.constant dense<0.000000e+00> : vector<28x384xf32>
    %8 = tpu.matmul %6, %7, %cst_10 {dimension_numbers = #tpu.dot_dimension_numbers<[1], [0], [0], [1], [0, 0, 1, 1], [], []>} : vector<28x5xbf16>, vector<5x384xbf16>, vector<28x384xf32> -> vector<28x384xf32>
    %9 = arith.addf %5, %8 : vector<28x384xf32>
    %10 = arith.truncf %9 : vector<28x384xf32> to vector<28x384xbf16>
    %c0_11 = arith.constant 0 : index
    %c0_12 = arith.constant 0 : index
    %11 = vector.load %arg6[%c0_11, %c0_12] : memref<384x512xbf16, #tpu.memory_space<vmem>>, vector<384x512xbf16>
    %cst_13 = arith.constant dense<0.000000e+00> : vector<28x512xf32>
    %12 = tpu.matmul %10, %11, %cst_13 {dimension_numbers = #tpu.dot_dimension_numbers<[1], [0], [0], [1], [0, 0, 1, 1], [], []>} : vector<28x384xbf16>, vector<384x512xbf16>, vector<28x512xf32> -> vector<28x512xf32>
    %c0_14 = arith.constant 0 : index
    %c0_15 = arith.constant 0 : index
    %13 = vector.load %arg7[%c0_14, %c0_15] : memref<28x512xf32, #tpu.memory_space<vmem>>, vector<28x512xf32>
    tpu.vector_store %arg7[%c0_14, %c0_15], %12 {strides = array<i32>} : memref<28x512xf32, #tpu.memory_space<vmem>>, vector<28x512xf32>,
    return
  }
  func.func @transform_0(%arg0: i32) -> (i32, i32) {
    %c0_i32 = arith.constant 0 : i32
    %c0_i32_0 = arith.constant 0 : i32
    %c0_i32_1 = arith.constant 0 : i32
    return %c0_i32, %c0_i32_0 : i32, i32
  }
  func.func @transform_1(%arg0: i32) -> (i32, i32) {
    %c0_i32 = arith.constant 0 : i32
    %c0_i32_0 = arith.constant 0 : i32
    %c0_i32_1 = arith.constant 0 : i32
    return %c0_i32, %c0_i32_0 : i32, i32
  }
  func.func @transform_2(%arg0: i32) -> (i32, i32) {
    %c0_i32 = arith.constant 0 : i32
    %c0_i32_0 = arith.constant 0 : i32
    %c0_i32_1 = arith.constant 0 : i32
    return %c0_i32, %c0_i32_0 : i32, i32
  }
  func.func @transform_3(%arg0: i32) -> (i32, i32) {
    %c0_i32 = arith.constant 0 : i32
    %c0_i32_0 = arith.constant 0 : i32
    %c0_i32_1 = arith.constant 0 : i32
    return %c0_i32, %c0_i32_0 : i32, i32
  }
  func.func @transform_4(%arg0: i32) -> (i32, i32) {
    %c0_i32 = arith.constant 0 : i32
    %c0_i32_0 = arith.constant 0 : i32
    %c0_i32_1 = arith.constant 0 : i32
    return %c0_i32, %c0_i32_0 : i32, i32
  }
  func.func @transform_5(%arg0: i32) -> (i32, i32) {
    %c0_i32 = arith.constant 0 : i32
    %c0_i32_0 = arith.constant 0 : i32
    %c0_i32_1 = arith.constant 0 : i32
    return %c0_i32, %c0_i32_0 : i32, i32
  }
  func.func @transform_6(%arg0: i32) -> (i32, i32) {
    %c0_i32 = arith.constant 0 : i32
    %c0_i32_0 = arith.constant 0 : i32
    %c0_i32_1 = arith.constant 0 : i32
    return %c0_i32, %c0_i32_0 : i32, i32
  }
}

</mosaic_0001>

<bundles_post_ra>
// kernel: tile.0
= control target key start
LH: loop header
LB: loop body
LE: loop exit
PB: predicated region body
PF: predicated region fallthrough
CT: control target
= control target key end

     0   :  { %vm66_vm0 = vcmask 113664   ;;  %vm72_vm1 = vcmask 228464   ;;  %v90_v12 = vmov 0.0   ;;  %s116_s0 = inlined_call_operand.vmem [shape: bf16[2,14,4], index: 0, kind: input, shape index: {}]   ;;  %s117_s1 = inlined_call_operand.vmem [shape: bf16[28,4], index: 1, kind: output, shape index: {}]  }
   0x1   :  { %v84_v0 = vld [vmem:[%s116_s0 + $0x3] sm:$0x1]  ;;  %v85_v1 = vld [vmem:[%s116_s0 + $0x2] sm:$0x1]  ;;  %v86_v2 = vld [vmem:[%s116_s0 + $0x1] sm:$0x1] }
   0x2   :  { %v17_v3 = vunpack.c.l.bf16 %v84_v0  ;;  %v33_v4 = vunpack.c.l.bf16 %v85_v1  ;;  %v48_v5 = vunpack.c.l.bf16 %v86_v2  ;;  %v61_v6 = vld [vmem:[%s116_s0] sm:$0x1]  ;;  %s89_s0 = smov 14  }
   0x3   :  { %v62_v7 = vunpack.c.l.bf16 %v61_v6 }
   0x4   :  { %20 = vst [vmem:[#allocation1 + $0x18] sm:$0x3] %v17_v3  ;;  %36 = vst [vmem:[#allocation1 + $0x10] sm:$0x3] %v33_v4 }
   0x5   :  { %51 = vst [vmem:[#allocation1 + $0x8] sm:$0x3] %v48_v5  ;;  %64 = vst [vmem:[#allocation1] sm:$0x3] %v62_v7 }
   0xc   :  { %v69_v8 = vld [vmem:[#allocation1 + $0x1] ss:$8 sm:$0xf]   ;;  %v65_v9 = vld [vmem:[#allocation1] ss:$8 sm:$0xf]  }
   0xd   :  { %70 = vrot.lane.b32.xlu0 %v69_v8, %s89_s0  ;;  %67 = vst.msk [vmem:[#allocation0] sm:$0xf] %vm66_vm0, %v65_v9  }
  0x7f   :  { %v71_v10 = vpop.permute.xlu0 %70  }
  0x80   :  { %73 = vst.msk [vmem:[#allocation0] sm:$0xf] %vm72_vm1, %v71_v10  }
  0x87   :  { %v78_v11 = vld [vmem:[#allocation0] sm:$0xf] }
  0x88   :  { %v79_v13 = vpack.c.bf16 %v90_v12, %v78_v11 }
  0x8a   :  { %81 = vst [vmem:[%s117_s1] sm:$0x3] %v79_v13 }

// kernel: forward.1
= control target key start
LH: loop header
LB: loop body
LE: loop exit
PB: predicated region body
PF: predicated region fallthrough
CT: control target
= control target key end

     0   :  { %vm957_vm0 = vcmask 1041408   ;;  %vm958_vm1 = vcmask 1042432   ;;  %vm950_vm2 = vcmask 39936   ;;  %vm1089_vm3 = vcmask 1045504   ;;  %s3355_s1 = inlined_call_operand.vmem [shape: bf16[512,384], index: 1, kind: input, shape index: {}]   ;;  %s3356_s0 = inlined_call_operand.vmem [shape: bf16[28,512], index: 0, kind: input, shape index: {}]   ;;  %s3357_s2 = inlined_call_operand.vmem [shape: bf16[5,384], index: 2, kind: input, shape index: {}]   ;;  %s3358_s4 = inlined_call_operand.vmem [shape: bf16[28,5], index: 4, kind: input, shape index: {}]   ;;  %s3359_s3 = inlined_call_operand.vmem [shape: bf16[28,28], index: 3, kind: input, shape index: {}]   ;;  %s3360_s5 = inlined_call_operand.vmem [shape: bf16[384,512], index: 5, kind: input, shape index: {}]   ;;  %s3361_s6 = inlined_call_operand.vmem [shape: f32[28,512], index: 6, kind: output, shape index: {}]  }
   0x1   :  { %v2347_v0 = vld [vmem:[%s3355_s1 + $0x4] ss:$12 sps:$4 sm:$0xff]   ;;  %v2349_v1 = vld [vmem:[%s3355_s1] ss:$12 sps:$4 sm:$0xff]   ;;  %v2350_v2 = vld [vmem:[%s3355_s1 + $0x1c] ss:$12 sps:$4 sm:$0xff]  }
   0x2   :  { %712 = vmatprep.subr.bf16.mxu0 %v2347_v0  ;;  %v2352_v3 = vld [vmem:[%s3355_s1 + $0x18] ss:$12 sps:$4 sm:$0xff]   ;;  %v2353_v4 = vld [vmem:[%s3355_s1 + $0x34] ss:$12 sps:$4 sm:$0xff]   ;;  %v2355_v5 = vld [vmem:[%s3355_s1 + $0x30] ss:$12 sps:$4 sm:$0xff]  }
   0x3   :  { %713 = vmatpush1.bf16.msra.mxu0 %v2349_v1  ;;  %v2356_v6 = vld [vmem:[%s3355_s1 + $0x4c] ss:$12 sps:$4 sm:$0xff]   ;;  %v2358_v7 = vld [vmem:[%s3355_s1 + $0x48] ss:$12 sps:$4 sm:$0xff]   ;;  %v2359_v8 = vld [vmem:[%s3355_s1 + $0x64] ss:$12 sps:$4 sm:$0xff]  }
   0x4   :  { %714 = vmatprep.subr.bf16.mxu0 %v2350_v2  ;;  %v2361_v9 = vld [vmem:[%s3355_s1 + $0x60] ss:$12 sps:$4 sm:$0xff]   ;;  %v2362_v10 = vld [vmem:[%s3355_s1 + $0x7c] ss:$12 sps:$4 sm:$0xff]   ;;  %v2364_v11 = vld [vmem:[%s3355_s1 + $0x78] ss:$12 sps:$4 sm:$0xff]  }
   0x5   :  { %v2365_v12 = vld [vmem:[%s3355_s1 + $0x94] ss:$12 sps:$4 sm:$0xff]   ;;  %v2367_v15 = vld [vmem:[%s3355_s1 + $0x90] ss:$12 sps:$4 sm:$0xff]   ;;  %v2368_v18 = vld [vmem:[%s3355_s1 + $0xac] ss:$12 sps:$4 sm:$0xff]  }
   0x6   :  { %v2389_v13 = vld [vmem:[%s3355_s1 + $0xc8] ss:$12 sps:$4 sm:$0xff]   ;;  %v2394_v16 = vld [vmem:[%s3355_s1 + $0xe0] ss:$12 sps:$4 sm:$0xff]   ;;  %v2399_v20 = vld [vmem:[%s3355_s1 + $0xf8] ss:$12 sps:$4 sm:$0xff]  }
   0x7   :  { %715 = vmatpush1.bf16.msra.mxu0 %v2352_v3  ;;  %v2390_v14 = vld [vmem:[%s3355_s1 + $0x8] ss:$12 sps:$4 sm:$0xff]   ;;  %2231 = vmatprep.subr.bf16.mxu1 %v2389_v13  ;;  %v2395_v17 = vld [vmem:[%s3355_s1 + $0x20] ss:$12 sps:$4 sm:$0xff]   ;;  %v2400_v21 = vld [vmem:[%s3355_s1 + $0x38] ss:$12 sps:$4 sm:$0xff]  }
   0x8   :  { %716 = vmatprep.subr.bf16.mxu0 %v2353_v4  ;;  %2232 = vmatpush3.bf16.msra.mxu1 %v2390_v14  ;;  %v2370_v19 = vld [vmem:[%s3355_s1 + $0xa8] ss:$12 sps:$4 sm:$0xff]   ;;  %v2371_v22 = vld [vmem:[%s3355_s1 + $0xc4] ss:$12 sps:$4 sm:$0xff]   ;;  %v2373_v24 = vld [vmem:[%s3355_s1 + $0xc0] ss:$12 sps:$4 sm:$0xff]  }
   0x9   :  { %2233 = vmatprep.subr.bf16.mxu1 %v2394_v16  ;;  %v2403_v23 = vld [vmem:[%s3356_s0 + $0x4] ss:$16 sps:$4 sm:$0xff]   ;;  %v2407_v25 = vld [vmem:[%s3355_s1 + $0x110] ss:$12 sps:$4 sm:$0xff]   ;;  %v2417_v32 = vld [vmem:[%s3355_s1 + $0x140] ss:$12 sps:$4 sm:$0xff]  }
   0xa   :  { %744 = vmatprep.mubr.bf16.mxu0 %v2403_v23  ;;  %v2408_v26 = vld [vmem:[%s3355_s1 + $0x50] ss:$12 sps:$4 sm:$0xff]   ;;  %850 = vmatprep.mubr.bf16.mxu1 %v2403_v23  ;;  %v2376_v28 = vld [vmem:[%s3355_s1 + $0xd8] ss:$12 sps:$4 sm:$0xff]   ;;  %v2412_v29 = vld [vmem:[%s3355_s1 + $0x128] ss:$12 sps:$4 sm:$0xff]  }
   0xb   :  { %717 = vmatpush1.bf16.msra.mxu0 %v2355_v5  ;;  %v2374_v27 = vld [vmem:[%s3355_s1 + $0xdc] ss:$12 sps:$4 sm:$0xff]   ;;  %v2377_v31 = vld [vmem:[%s3355_s1 + $0xf4] ss:$12 sps:$4 sm:$0xff]   ;;  %v2380_v35 = vld [vmem:[%s3355_s1 + $0x10c] ss:$12 sps:$4 sm:$0xff]  }
   0xc   :  { %718 = vmatprep.subr.bf16.mxu0 %v2356_v6  ;;  %2234 = vmatpush3.bf16.msra.mxu1 %v2395_v17  ;;  %v2413_v30 = vld [vmem:[%s3355_s1 + $0x68] ss:$12 sps:$4 sm:$0xff]   ;;  %v2418_v33 = vld [vmem:[%s3355_s1 + $0x80] ss:$12 sps:$4 sm:$0xff]   ;;  %v2379_v34 = vld [vmem:[%s3355_s1 + $0xf0] ss:$12 sps:$4 sm:$0xff]  }
   0xd   :  { %2235 = vmatprep.subr.bf16.mxu1 %v2399_v20  ;;  %v2422_v36 = vld [vmem:[%s3355_s1 + $0x158] ss:$12 sps:$4 sm:$0xff]   ;;  %v2382_v37 = vld [vmem:[%s3355_s1 + $0x108] ss:$12 sps:$4 sm:$0xff]   ;;  %v2427_v40 = vld [vmem:[%s3355_s1 + $0x170] ss:$12 sps:$4 sm:$0xff]  }
   0xe   :  { %v2423_v38 = vld [vmem:[%s3355_s1 + $0x98] ss:$12 sps:$4 sm:$0xff]   ;;  %v2385_v41 = vld [vmem:[%s3355_s1 + $0x120] ss:$12 sps:$4 sm:$0xff]   ;;  %v2428_v42 = vld [vmem:[%s3355_s1 + $0xb0] ss:$12 sps:$4 sm:$0xff]  }
   0xf   :  { %719 = vmatpush1.bf16.msra.mxu0 %v2358_v7  ;;  %v2383_v39 = vld [vmem:[%s3355_s1 + $0x124] ss:$12 sps:$4 sm:$0xff]   ;;  %v2432_v43 = vld [vmem:[%s3355_s1 + $0x248] ss:$12 sps:$4 sm:$0xff]   ;;  %v2437_v48 = vld [vmem:[%s3355_s1 + $0x260] ss:$12 sps:$4 sm:$0xff]  }
  0x10   :  { %720 = vmatprep.subr.bf16.mxu0 %v2359_v8  ;;  %2236 = vmatpush3.bf16.msra.mxu1 %v2400_v21  ;;  %v2386_v44 = vld [vmem:[%s3355_s1 + $0x13c] ss:$12 sps:$4 sm:$0xff]   ;;  %v2388_v45 = vld [vmem:[%s3355_s1 + $0x138] ss:$12 sps:$4 sm:$0xff]   ;;  %v2401_v46 = vld [vmem:[%s3356_s0] ss:$16 sps:$4 sm:$0xff]  }
  0x11   :  { %2237 = vmatprep.subr.bf16.mxu1 %v2407_v25  ;;  %v2433_v47 = vld [vmem:[%s3355_s1 + $0x188] ss:$12 sps:$4 sm:$0xff]   ;;  %v2393_v50 = vld [vmem:[%s3355_s1 + $0x150] ss:$12 sps:$4 sm:$0xff]   ;;  %v2438_v51 = vld [vmem:[%s3355_s1 + $0x1a0] ss:$12 sps:$4 sm:$0xff]  }
  0x12   :  { %v2391_v49 = vld [vmem:[%s3355_s1 + $0x154] ss:$12 sps:$4 sm:$0xff]   ;;  %v2442_v52 = vld [vmem:[%s3355_s1 + $0x278] ss:$12 sps:$4 sm:$0xff]   ;;  %v2447_v56 = vld [vmem:[%s3355_s1 + $0x290] ss:$12 sps:$4 sm:$0xff]  }
  0x13   :  { %721 = vmatpush1.bf16.msra.mxu0 %v2361_v9  ;;  %v2396_v53 = vld [vmem:[%s3355_s1 + $0x16c] ss:$12 sps:$4 sm:$0xff]   ;;  %v2398_v55 = vld [vmem:[%s3355_s1 + $0x168] ss:$12 sps:$4 sm:$0xff]   ;;  %v2406_v57 = vld [vmem:[%s3355_s1 + $0x184] ss:$12 sps:$4 sm:$0xff]  }
  0x14   :  { %722 = vmatprep.subr.bf16.mxu0 %v2362_v10  ;;  %2238 = vmatpush3.bf16.msra.mxu1 %v2408_v26  ;;  %v2443_v54 = vld [vmem:[%s3355_s1 + $0x1b8] ss:$12 sps:$4 sm:$0xff]   ;;  %v2404_v58 = vld [vmem:[%s3355_s1 + $0x180] ss:$12 sps:$4 sm:$0xff]   ;;  %v2448_v59 = vld [vmem:[%s3355_s1 + $0x1d0] ss:$12 sps:$4 sm:$0xff]  }
  0x15   :  { %2239 = vmatprep.subr.bf16.mxu1 %v2412_v29  ;;  %v2452_v60 = vld [vmem:[%s3355_s1 + $0x2a8] ss:$12 sps:$4 sm:$0xff]   ;;  %v2409_v62 = vld [vmem:[%s3355_s1 + $0x198] ss:$12 sps:$4 sm:$0xff]   ;;  %v2457_v1 = vld [vmem:[%s3355_s1 + $0x2c0] ss:$12 sps:$4 sm:$0xff]  }
  0x16   :  { %v2411_v61 = vld [vmem:[%s3355_s1 + $0x19c] ss:$12 sps:$4 sm:$0xff]   ;;  %v2416_v63 = vld [vmem:[%s3355_s1 + $0x1b4] ss:$12 sps:$4 sm:$0xff]   ;;  %v2465_v6 = vld [vmem:[%s3355_s1 + $0x2d8] ss:$12 sps:$4 sm:$0xff]  }
  0x17   :  { %723 = vmatpush1.bf16.msra.mxu0 %v2364_v11  ;;  %v2453_v0 = vld [vmem:[%s3355_s1 + $0x1e8] ss:$12 sps:$4 sm:$0xff]   ;;  %v2464_v3 = vld [vmem:[%s3356_s0 + $0x20] ss:$16 sps:$4 sm:$0x3f]   ;;  %v2638_v13 = vmov 65535  }
  0x18   :  { %724 = vmatprep.subr.bf16.mxu0 %v2365_v12  ;;  %2240 = vmatpush3.bf16.msra.mxu1 %v2413_v30  ;;  %v2462_v2 = vld [vmem:[%s3356_s0 + $0x24] ss:$16 sps:$4 sm:$0x3f]   ;;  %v2414_v4 = vld [vmem:[%s3355_s1 + $0x1b0] ss:$12 sps:$4 sm:$0xff]   ;;  %v959_v14 = vsel %vm957_vm0, 4294967295, %v2638_v13 }
  0x19   :  { %2241 = vmatprep.subr.bf16.mxu1 %v2417_v32  ;;  %v2458_v5 = vld [vmem:[%s3355_s1 + $0x200] ss:$12 sps:$4 sm:$0xff]   ;;  %v2419_v8 = vld [vmem:[%s3355_s1 + $0x1c8] ss:$12 sps:$4 sm:$0xff]   ;;  %v2466_v9 = vld [vmem:[%s3355_s1 + $0x218] ss:$12 sps:$4 sm:$0xff]  }
  0x1a   :  { %v2421_v7 = vld [vmem:[%s3355_s1 + $0x1cc] ss:$12 sps:$4 sm:$0xff]   ;;  %v2470_v10 = vld [vmem:[%s3355_s1 + $0x2f0] ss:$12 sps:$4 sm:$0xff]   ;;  %v2436_v26 = vld [vmem:[%s3355_s1 + $0x214] ss:$12 sps:$4 sm:$0xff]  }
  0x1b   :  { %725 = vmatpush1.bf16.msra.mxu0 %v2367_v15  ;;  %v2477_v11 = vld [vmem:[%s3356_s0 + $0xc] ss:$16 sps:$4 sm:$0xff]   ;;  %v2426_v12 = vld [vmem:[%s3355_s1 + $0x1e4] ss:$12 sps:$4 sm:$0xff]   ;;  %v2475_v20 = vld [vmem:[%s3356_s0 + $0x8] ss:$16 sps:$4 sm:$0xff]  }
  0x1c   :  { %726 = vmatprep.subr.bf16.mxu0 %v2368_v18  ;;  %2242 = vmatpush3.bf16.msra.mxu1 %v2418_v33  ;;  %v2471_v15 = vld [vmem:[%s3355_s1 + $0x230] ss:$12 sps:$4 sm:$0xff]   ;;  %v2424_v16 = vld [vmem:[%s3355_s1 + $0x1e0] ss:$12 sps:$4 sm:$0xff]   ;;  %v2429_v23 = vld [vmem:[%s3355_s1 + $0x1f8] ss:$12 sps:$4 sm:$0xff]  }
  0x1d   :  { %2243 = vmatprep.subr.bf16.mxu1 %v2422_v36  ;;  %v2431_v17 = vld [vmem:[%s3355_s1 + $0x1fc] ss:$12 sps:$4 sm:$0xff]   ;;  %v930_v18 = vld [vmem:[%s3357_s2] sm:$0x77]  ;;  %v2441_v29 = vld [vmem:[%s3355_s1 + $0x22c] ss:$12 sps:$4 sm:$0xff]  }
  0x1e   :  { %v2121_v21 = vcombine.low %v930_v18, %v930_v18  ;;  %v2439_v30 = vld [vmem:[%s3355_s1 + $0x228] ss:$12 sps:$4 sm:$0xff]   ;;  %v2446_v32 = vld [vmem:[%s3355_s1 + $0x244] ss:$12 sps:$4 sm:$0xff]   ;;  %v2444_v33 = vld [vmem:[%s3355_s1 + $0x240] ss:$12 sps:$4 sm:$0xff]  }
  0x1f   :  { %727 = vmatpush1.bf16.msra.mxu0 %v2370_v19  ;;  %v2919_v19 = vsel %vm958_vm1, %v959_v14, 0  ;;  %v2456_v36 = vld [vmem:[%s3355_s1 + $0x274] ss:$12 sps:$4 sm:$0xff]   ;;  %v2553_v13 = vld [vmem:[%s3360_s5 + $0x12c] ss:$16 sps:$4 sm:$0xff]   ;;  %vm1082_vm4 = vcmask 228352  }
  0x20   :  { %728 = vmatprep.subr.bf16.mxu0 %v2371_v22  ;;  %2244 = vmatpush3.bf16.msra.mxu1 %v2423_v38  ;;  %v2122_v22 = vcombine.high %v930_v18, %v930_v18  ;;  %v962_v25 = vand.u32 %v2121_v21, %v2919_v19  ;;  %v2461_v38 = vld [vmem:[%s3355_s1 + $0x28c] ss:$12 sps:$4 sm:$0xff]  }
  0x21   :  { %2245 = vmatprep.subr.bf16.mxu1 %v2427_v40  ;;  %v2469_v40 = vld [vmem:[%s3355_s1 + $0x2a4] ss:$12 sps:$4 sm:$0xff]   ;;  %v2551_v18 = vld [vmem:[%s3360_s5 + $0x128] ss:$16 sps:$4 sm:$0xff]  }
  0x23   :  { %729 = vmatpush1.bf16.msra.mxu0 %v2373_v24  ;;  %v965_v24 = vand.u32 %v2122_v22, %v2919_v19  ;;  %v2557_v22 = vld [vmem:[%s3360_s5 + $0x148] ss:$16 sps:$4 sm:$0xff]  }
  0x24   :  { %730 = vmatprep.subr.bf16.mxu0 %v2374_v27  ;;  %2246 = vmatpush3.bf16.msra.mxu1 %v2428_v42  ;;  %v2484_v27 = vld [vmem:[%s3356_s0 + $0x2c] ss:$16 sps:$4 sm:$0x3f]  }
  0x25   :  { %2259 = vmatprep.subr.bf16.mxu1 %v2432_v43  ;;  %v2474_v42 = vld [vmem:[%s3355_s1 + $0x2bc] ss:$12 sps:$4 sm:$0xff]   ;;  %v2472_v43 = vld [vmem:[%s3355_s1 + $0x2b8] ss:$12 sps:$4 sm:$0xff]  }
  0x27   :  { %731 = vmatpush1.bf16.msra.mxu0 %v2376_v28  ;;  %851 = vmatmul.mubr.bf16.vlgmr.msra.gmra.mrb[0].mxu1 %v2401_v46  ;;  %v2434_v28 = vld [vmem:[%s3355_s1 + $0x210] ss:$12 sps:$4 sm:$0xff]  }
  0x28   :  { %732 = vmatprep.subr.bf16.mxu0 %v2377_v31  ;;  %2260 = vmatpush3.bf16.msra.mxu1 %v2433_v47  ;;  %v2486_v31 = vld [vmem:[%s3356_s0 + $0x28] ss:$16 sps:$4 sm:$0x3f]  }
  0x29   :  { %2261 = vmatprep.subr.bf16.mxu1 %v2437_v48  ;;  %858 = vmatprep.mubr.bf16.mxu1 %v2462_v2  ;;  %v2481_v47 = vld [vmem:[%s3355_s1 + $0x2e8] ss:$12 sps:$4 sm:$0xff]   ;;  %v2639_v48 = vmov 0  }
  0x2b   :  { %733 = vmatpush1.bf16.msra.mxu0 %v2379_v34  ;;  %v2451_v34 = vld [vmem:[%s3355_s1 + $0x25c] ss:$12 sps:$4 sm:$0xff]  }
  0x2c   :  { %734 = vmatprep.subr.bf16.mxu0 %v2380_v35  ;;  %2262 = vmatpush3.bf16.msra.mxu1 %v2438_v51  ;;  %v2449_v35 = vld [vmem:[%s3355_s1 + $0x258] ss:$12 sps:$4 sm:$0xff]  }
  0x2d   :  { %2263 = vmatprep.subr.bf16.mxu1 %v2442_v52  ;;  %v2491_v52 = vld [vmem:[%s3358_s4 + $0x8] sm:$0x3f]  }
  0x2f   :  { %735 = vmatpush1.bf16.msra.mxu0 %v2382_v37  ;;  %859 = vmatmul.mubr.bf16.gmra.mrb[4].mxu1 %v2464_v3  ;;  %v2454_v37 = vld [vmem:[%s3355_s1 + $0x270] ss:$12 sps:$4 sm:$0xff]  }
  0x30   :  { %736 = vmatprep.subr.bf16.mxu0 %v2383_v39  ;;  %2264 = vmatpush3.bf16.msra.mxu1 %v2443_v54  ;;  %v2459_v39 = vld [vmem:[%s3355_s1 + $0x288] ss:$12 sps:$4 sm:$0xff]   ;;  %v2499_v54 = vld [vmem:[%s3360_s5 + $0xc] ss:$16 sps:$4 sm:$0xff]  }
  0x31   :  { %2265 = vmatprep.subr.bf16.mxu1 %v2447_v56  ;;  %899 = vmatprep.mubr.bf16.mxu1 %v2477_v11  ;;  %v2505_v56 = vld [vmem:[%s3360_s5 + $0x2c] ss:$16 sps:$4 sm:$0xff]  }
  0x33   :  { %737 = vmatpush1.bf16.msra.mxu0 %v2385_v41  ;;  %v2467_v41 = vld [vmem:[%s3355_s1 + $0x2a0] ss:$12 sps:$4 sm:$0xff]  }
  0x34   :  { %738 = vmatprep.subr.bf16.mxu0 %v2386_v44  ;;  %2266 = vmatpush3.bf16.msra.mxu1 %v2448_v59  ;;  %v2480_v44 = vld [vmem:[%s3355_s1 + $0x2d4] ss:$12 sps:$4 sm:$0xff]   ;;  %v2517_v59 = vld [vmem:[%s3360_s5 + $0x6c] ss:$16 sps:$4 sm:$0xff]  }
  0x35   :  { %2267 = vmatprep.subr.bf16.mxu1 %v2452_v60  ;;  %v2515_v60 = vld [vmem:[%s3360_s5 + $0x68] ss:$16 sps:$4 sm:$0xff]  }
  0x37   :  { %739 = vmatpush1.bf16.msra.mxu0 %v2388_v45  ;;  %v2478_v45 = vld [vmem:[%s3355_s1 + $0x2d0] ss:$12 sps:$4 sm:$0xff]  }
  0x38   :  { %740 = vmatprep.subr.bf16.mxu0 %v2391_v49  ;;  %2268 = vmatpush3.bf16.msra.mxu1 %v2453_v0  ;;  %v2489_v49 = vld [vmem:[%s3358_s4] sm:$0xff]   ;;  %v2521_v0 = vld [vmem:[%s3360_s5 + $0x88] ss:$16 sps:$4 sm:$0xff]  }
  0x39   :  { %2269 = vmatprep.subr.bf16.mxu1 %v2457_v1  ;;  %v2529_v1 = vld [vmem:[%s3360_s5 + $0xac] ss:$16 sps:$4 sm:$0xff]  }
  0x3b   :  { %741 = vmatpush1.bf16.msra.mxu0 %v2393_v50  ;;  %v2490_v50 = vld [vmem:[%s3357_s2 + $0x8] ss:$0 sps:$4 sm:$0x77]  }
  0x3c   :  { %742 = vmatprep.subr.bf16.mxu0 %v2396_v53  ;;  %2270 = vmatpush3.bf16.msra.mxu1 %v2458_v5  ;;  %v968_v51 = vand.u32 %v2490_v50, %v2919_v19  ;;  %v2497_v53 = vld [vmem:[%s3360_s5 + $0x8] ss:$16 sps:$4 sm:$0xff]   ;;  %v2559_v19 = vld [vmem:[%s3360_s5 + $0x14c] ss:$16 sps:$4 sm:$0xff]  }
  0x3d   :  { %2271 = vmatprep.subr.bf16.mxu1 %v2465_v6  ;;  %v2527_v6 = vld [vmem:[%s3360_s5 + $0xa8] ss:$16 sps:$4 sm:$0xff]  }
  0x3f   :  { %743 = vmatpush1.bf16.msra.mxu0 %v2398_v55  ;;  %v2503_v55 = vld [vmem:[%s3360_s5 + $0x28] ss:$16 sps:$4 sm:$0xff]  }
  0x40   :  { %765 = vmatprep.subr.bf16.mxu0 %v2406_v57  ;;  %2272 = vmatpush3.bf16.msra.mxu1 %v2466_v9  ;;  %v2511_v57 = vld [vmem:[%s3360_s5 + $0x4c] ss:$16 sps:$4 sm:$0xff]  }
  0x41   :  { %2273 = vmatprep.subr.bf16.mxu1 %v2470_v10  ;;  %v2541_v9 = vld [vmem:[%s3360_s5 + $0xec] ss:$16 sps:$4 sm:$0xff]   ;;  %v2539_v10 = vld [vmem:[%s3360_s5 + $0xe8] ss:$16 sps:$4 sm:$0xff]  }
  0x42   :  { %745 = vmatmul.mubr.bf16.vlgmr.msra.gmra.mrb[0].mxu0 %v2401_v46  ;;  %v2483_v46 = vld [vmem:[%s3355_s1 + $0x2ec] ss:$12 sps:$4 sm:$0xff]  }
  0x43   :  { %766 = vmatpush1.bf16.msra.mxu0 %v2404_v58  ;;  %754 = vmatprep.mubr.bf16.mxu0 %v2462_v2  ;;  %v2509_v58 = vld [vmem:[%s3360_s5 + $0x48] ss:$16 sps:$4 sm:$0xff]  }
  0x44   :  { %767 = vmatprep.subr.bf16.mxu0 %v2411_v61  ;;  %2274 = vmatpush3.bf16.msra.mxu1 %v2471_v15  ;;  %v2523_v61 = vld [vmem:[%s3360_s5 + $0x8c] ss:$16 sps:$4 sm:$0xff]  }
  0x45   :  { %970 = vmatprep.subr.bf16.mxu1 %v965_v24  ;;  %v2563_v24 = vld [vmem:[%s3360_s5 + $0x168] ss:$16 sps:$4 sm:$0xff]  }
  0x47   :  { %768 = vmatpush1.bf16.msra.mxu0 %v2409_v62  ;;  %900 = vmatmul.mubr.bf16.vlgmr.msra.gmra.mrb[8].mxu1 %v2475_v20 }
  0x48   :  { %769 = vmatprep.subr.bf16.mxu0 %v2416_v63  ;;  %907 = vmatprep.mubr.bf16.mxu1 %v2484_v27 }
  0x49   :  { %971 = vmatpush1.bf16.msra.mxu1 %v962_v25  ;;  %v2571_v25 = vld [vmem:[%s3360_s5 + $0x18c] ss:$16 sps:$4 sm:$0xff]  }
  0x4a   :  { %755 = vmatmul.mubr.bf16.gmra.mrb[4].mxu0 %v2464_v3  ;;  %2294 = vmatprep.subr.bf16.mxu1 %v968_v51 }
  0x4b   :  { %770 = vmatpush1.bf16.msra.mxu0 %v2414_v4  ;;  %797 = vmatprep.mubr.bf16.mxu0 %v2477_v11  ;;  %v2547_v11 = vld [vmem:[%s3360_s5 + $0x10c] ss:$16 sps:$4 sm:$0xff]  }
  0x4c   :  { %771 = vmatprep.subr.bf16.mxu0 %v2421_v7  ;;  %v2535_v7 = vld [vmem:[%s3360_s5 + $0xcc] ss:$16 sps:$4 sm:$0xff]  }
  0x4f   :  { %772 = vmatpush1.bf16.msra.mxu0 %v2419_v8  ;;  %908 = vmatmul.mubr.bf16.gmra.mrb[12].mxu1 %v2486_v31  ;;  %v2533_v8 = vld [vmem:[%s3360_s5 + $0xc8] ss:$16 sps:$4 sm:$0xff]  }
  0x50   :  { %773 = vmatprep.subr.bf16.mxu0 %v2426_v12  ;;  %1002 = vmatprep.mubr.bf16.mxu1 %v2639_v48  ;;  %v2545_v12 = vld [vmem:[%s3360_s5 + $0x108] ss:$16 sps:$4 sm:$0xff]  }
  0x53   :  { %774 = vmatpush1.bf16.msra.mxu0 %v2424_v16 }
  0x54   :  { %775 = vmatprep.subr.bf16.mxu0 %v2431_v17 }
  0x57   :  { %776 = vmatpush1.bf16.msra.mxu0 %v2429_v23  ;;  %2124 = vmatmul.mubr.msk.bf16.vlgmr.msra.gmra.mrb[16].mxu1 %vm950_vm2, %v2489_v49  ;;  %v2565_v23 = vld [vmem:[%s3360_s5 + $0x16c] ss:$16 sps:$4 sm:$0xff]  }
  0x58   :  { %777 = vmatprep.subr.bf16.mxu0 %v2436_v26  ;;  %1012 = vmatprep.mubr.bf16.mxu1 %v2639_v48 }
  0x59   :  { %2295 = vmatpush3.bf16.msra.mxu1 %v968_v51 }
  0x5b   :  { %778 = vmatpush1.bf16.msra.mxu0 %v2434_v28  ;;  %v2569_v28 = vld [vmem:[%s3360_s5 + $0x188] ss:$16 sps:$4 sm:$0xff]  }
  0x5c   :  { %779 = vmatprep.subr.bf16.mxu0 %v2441_v29 }
  0x5f   :  { %780 = vmatpush1.bf16.msra.mxu0 %v2439_v30  ;;  %2125 = vmatmul.mubr.msk.bf16.gmra.mrb[20].mxu1 %vm950_vm2, %v2491_v52 }
  0x60   :  { %781 = vmatprep.subr.bf16.mxu0 %v2446_v32  ;;  %2296 = vmatprep.mubr.msk.bf16.mxu1 %vm950_vm2, %v2489_v49 }
  0x63   :  { %782 = vmatpush1.bf16.msra.mxu0 %v2444_v33 }
  0x64   :  { %783 = vmatprep.subr.bf16.mxu0 %v2451_v34 }
  0x67   :  { %784 = vmatpush1.bf16.msra.mxu0 %v2449_v35  ;;  %2297 = vmatmul.mubr.msk.bf16.vlgmr.msra.gmra.mrb[24].mxu1 %vm950_vm2, %v2491_v52  ;;  %v2575_v35 = vld [vmem:[%s3360_s5 + $0x1a8] ss:$16 sps:$4 sm:$0xff]  }
  0x68   :  { %785 = vmatprep.subr.bf16.mxu0 %v2456_v36  ;;  %1131 = vmatprep.mubr.bf16.mxu1 %v2639_v48 }
  0x6b   :  { %786 = vmatpush1.bf16.msra.mxu0 %v2454_v37  ;;  %v2583_v37 = vld [vmem:[%s3360_s5 + $0x1cc] ss:$16 sps:$4 sm:$0xff]  }
  0x6c   :  { %787 = vmatprep.subr.bf16.mxu0 %v2461_v38 }
  0x6f   :  { %788 = vmatpush1.bf16.msra.mxu0 %v2459_v39 }
  0x70   :  { %789 = vmatprep.subr.bf16.mxu0 %v2469_v40 }
  0x73   :  { %790 = vmatpush1.bf16.msra.mxu0 %v2467_v41  ;;  %v2581_v41 = vld [vmem:[%s3360_s5 + $0x1c8] ss:$16 sps:$4 sm:$0xff]  }
  0x74   :  { %791 = vmatprep.subr.bf16.mxu0 %v2474_v42 }
  0x77   :  { %792 = vmatpush1.bf16.msra.mxu0 %v2472_v43 }
  0x78   :  { %793 = vmatprep.subr.bf16.mxu0 %v2480_v44 }
  0x7b   :  { %794 = vmatpush1.bf16.msra.mxu0 %v2478_v45 }
  0x7c   :  { %795 = vmatprep.subr.bf16.mxu0 %v2483_v46 }
  0x7f   :  { %796 = vmatpush1.bf16.msra.mxu0 %v2481_v47 }
  0x80   :  { %1889 = vmatprep.subr.bf16.mxu0 %v2499_v54 }
  0x82   :  { %798 = vmatmul.mubr.bf16.vlgmr.msra.gmra.mrb[0].mxu0 %v2475_v20 }
  0x83   :  { %807 = vmatprep.mubr.bf16.mxu0 %v2484_v27  ;;  %1890 = vmatpush1.bf16.msra.mxu0 %v2497_v53 }
  0x84   :  { %1891 = vmatprep.subr.bf16.mxu0 %v2505_v56 }
  0x87   :  { %1892 = vmatpush1.bf16.msra.mxu0 %v2503_v55 }
  0x88   :  { %1893 = vmatprep.subr.bf16.mxu0 %v2511_v57 }
  0x8a   :  { %808 = vmatmul.mubr.bf16.gmra.mrb[4].mxu0 %v2486_v31  ;;  %v2577_v31 = vld [vmem:[%s3360_s5 + $0x1ac] ss:$16 sps:$4 sm:$0xff]  }
  0x8b   :  { %1894 = vmatpush1.bf16.msra.mxu0 %v2509_v58 }
  0x8c   :  { %1895 = vmatprep.subr.bf16.mxu0 %v2517_v59 }
  0x8f   :  { %1896 = vmatpush1.bf16.msra.mxu0 %v2515_v60 }
  0x90   :  { %1897 = vmatprep.subr.bf16.mxu0 %v2523_v61 }
  0x93   :  { %1898 = vmatpush1.bf16.msra.mxu0 %v2521_v0 }
  0x94   :  { %1899 = vmatprep.subr.bf16.mxu0 %v2529_v1  ;;  %v2496_v1 = vld [vmem:[%s3360_s5 + $0x4] ss:$16 sps:$4 sm:$0xff]  }
  0x97   :  { %1900 = vmatpush1.bf16.msra.mxu0 %v2527_v6  ;;  %v2508_v6 = vld [vmem:[%s3360_s5 + $0x44] ss:$16 sps:$4 sm:$0xff]  }
  0x98   :  { %1901 = vmatprep.subr.bf16.mxu0 %v2535_v7  ;;  %v2506_v7 = vld [vmem:[%s3360_s5 + $0x40] ss:$16 sps:$4 sm:$0xff]  }
  0x9b   :  { %1902 = vmatpush1.bf16.msra.mxu0 %v2533_v8  ;;  %v2514_v8 = vld [vmem:[%s3360_s5 + $0x64] ss:$16 sps:$4 sm:$0xff]  }
  0x9c   :  { %1903 = vmatprep.subr.bf16.mxu0 %v2541_v9  ;;  %v2512_v9 = vld [vmem:[%s3360_s5 + $0x60] ss:$16 sps:$4 sm:$0xff]  }
  0x9f   :  { %1904 = vmatpush1.bf16.msra.mxu0 %v2539_v10  ;;  %v2520_v10 = vld [vmem:[%s3360_s5 + $0x84] ss:$16 sps:$4 sm:$0xff]  }
  0xa0   :  { %1905 = vmatprep.subr.bf16.mxu0 %v2547_v11  ;;  %v2518_v11 = vld [vmem:[%s3360_s5 + $0x80] ss:$16 sps:$4 sm:$0xff]  }
  0xa3   :  { %1906 = vmatpush1.bf16.msra.mxu0 %v2545_v12  ;;  %v2526_v12 = vld [vmem:[%s3360_s5 + $0xa4] ss:$16 sps:$4 sm:$0xff]  }
  0xa4   :  { %1907 = vmatprep.subr.bf16.mxu0 %v2553_v13  ;;  %v2524_v13 = vld [vmem:[%s3360_s5 + $0xa0] ss:$16 sps:$4 sm:$0xff]  }
  0xa7   :  { %1908 = vmatpush1.bf16.msra.mxu0 %v2551_v18  ;;  %v2544_v18 = vld [vmem:[%s3360_s5 + $0x104] ss:$16 sps:$4 sm:$0xff]  }
  0xa8   :  { %1909 = vmatprep.subr.bf16.mxu0 %v2559_v19  ;;  %v2542_v19 = vld [vmem:[%s3360_s5 + $0x100] ss:$16 sps:$4 sm:$0xff]  }
  0xab   :  { %1910 = vmatpush1.bf16.msra.mxu0 %v2557_v22  ;;  %v2556_v22 = vld [vmem:[%s3360_s5 + $0x144] ss:$16 sps:$4 sm:$0xff]  }
  0xac   :  { %1911 = vmatprep.subr.bf16.mxu0 %v2565_v23  ;;  %v2554_v23 = vld [vmem:[%s3360_s5 + $0x140] ss:$16 sps:$4 sm:$0xff]  }
  0xaf   :  { %1912 = vmatpush1.bf16.msra.mxu0 %v2563_v24  ;;  %v2562_v24 = vld [vmem:[%s3360_s5 + $0x164] ss:$16 sps:$4 sm:$0xff]  }
  0xb0   :  { %1913 = vmatprep.subr.bf16.mxu0 %v2571_v25  ;;  %v2560_v25 = vld [vmem:[%s3360_s5 + $0x160] ss:$16 sps:$4 sm:$0xff]  }
  0xb3   :  { %1914 = vmatpush1.bf16.msra.mxu0 %v2569_v28  ;;  %v2574_v28 = vld [vmem:[%s3360_s5 + $0x1a4] ss:$16 sps:$4 sm:$0xff]  }
  0xb4   :  { %1915 = vmatprep.subr.bf16.mxu0 %v2577_v31  ;;  %v2578_v31 = vld [vmem:[%s3360_s5 + $0x1c0] ss:$16 sps:$4 sm:$0xff]  }
  0xb7   :  { %1916 = vmatpush1.bf16.msra.mxu0 %v2575_v35  ;;  %v2587_v35 = vld [vmem:[%s3360_s5 + $0x1e8] ss:$16 sps:$4 sm:$0xff]  }
  0xb8   :  { %1917 = vmatprep.subr.bf16.mxu0 %v2583_v37  ;;  %v2595_v37 = vld [vmem:[%s3360_s5 + $0x20c] ss:$16 sps:$4 sm:$0xff]  }
  0xbb   :  { %1918 = vmatpush1.bf16.msra.mxu0 %v2581_v41 }
  0xfa   :  { %v2247_v62 = vpop.f32.mrb[0].mxu1 }
  0xfb   :  { %v2248_v63 = vpop.f32.mrb[1].mxu1 }
  0xfc   :  { %v2249_v2 = vadd.f32 %v2248_v63, %v2247_v62  ;;  %v2250_v3 = vpop.f32.mrb[2].mxu1  ;;  %v2492_v63 = vld [vmem:[%s3359_s3] sm:$0xff]  }
  0xfd   :  { %v2251_v4 = vpop.f32.mrb[3].mxu1 }
  0xfe   :  { %v2252_v5 = vadd.f32 %v2251_v4, %v2250_v3  ;;  %v2494_v3 = vld [vmem:[%s3360_s5] ss:$16 sps:$4 sm:$0xff]   ;;  %v2502_v4 = vld [vmem:[%s3360_s5 + $0x24] ss:$16 sps:$4 sm:$0xff]  }
 0x102   :  { %v2253_v14 = vpop.f32.mrb[4].mxu1 }
 0x103   :  { %v2254_v15 = vpop.f32.mrb[5].mxu1 }
 0x104   :  { %v2255_v16 = vadd.f32 %v2254_v15, %v2253_v14  ;;  %v2256_v17 = vpop.f32.mrb[6].mxu1  ;;  %v2532_v14 = vld [vmem:[%s3360_s5 + $0xc4] ss:$16 sps:$4 sm:$0xff]   ;;  %v2530_v15 = vld [vmem:[%s3360_s5 + $0xc0] ss:$16 sps:$4 sm:$0xff]  }
 0x105   :  { %v2257_v20 = vpop.f32.mrb[7].mxu1 }
 0x106   :  { %v2258_v21 = vadd.f32 %v2257_v20, %v2256_v17  ;;  %v2536_v17 = vld [vmem:[%s3360_s5 + $0xe0] ss:$16 sps:$4 sm:$0xff]   ;;  %v2550_v20 = vld [vmem:[%s3360_s5 + $0x124] ss:$16 sps:$4 sm:$0xff]  }
 0x11a   :  { %v2275_v26 = vpop.f32.mrb[8].mxu1 }
 0x11b   :  { %v2276_v27 = vpop.f32.mrb[9].mxu1 }
 0x11c   :  { %v2277_v29 = vadd.f32 %v2276_v27, %v2275_v26  ;;  %v2278_v30 = vpop.f32.mrb[10].mxu1  ;;  %v2568_v26 = vld [vmem:[%s3360_s5 + $0x184] ss:$16 sps:$4 sm:$0xff]   ;;  %v2566_v27 = vld [vmem:[%s3360_s5 + $0x180] ss:$16 sps:$4 sm:$0xff]  }
 0x11d   :  { %v2279_v32 = vpop.f32.mrb[11].mxu1 }
 0x11e   :  { %v902_v33 = vadd.f32 %v2277_v29, %v2249_v2  ;;  %v2280_v34 = vadd.f32 %v2279_v32, %v2278_v30  ;;  %v2493_v2 = vld [vmem:[%s3359_s3 + $0x8] sm:$0x3f]   ;;  %v2572_v29 = vld [vmem:[%s3360_s5 + $0x1a0] ss:$16 sps:$4 sm:$0xff]   ;;  %v2580_v30 = vld [vmem:[%s3360_s5 + $0x1c4] ss:$16 sps:$4 sm:$0xff]  }
 0x11f   :  { %v2586_v32 = vld [vmem:[%s3360_s5 + $0x1e4] ss:$16 sps:$4 sm:$0xff]  }
 0x120   :  { %v905_v36 = vadd.f32 %v2280_v34, %v2252_v5  ;;  %v2500_v5 = vld [vmem:[%s3360_s5 + $0x20] ss:$16 sps:$4 sm:$0xff]  }
 0x121   :  { %v2584_v34 = vld [vmem:[%s3360_s5 + $0x1e0] ss:$16 sps:$4 sm:$0xff]  }
 0x122   :  { %v2281_v38 = vpop.f32.mrb[12].mxu1  ;;  %v922_v39 = vpack.c.bf16 %v905_v36, %v902_v33  ;;  %v2589_v33 = vld [vmem:[%s3360_s5 + $0x1ec] ss:$16 sps:$4 sm:$0xff]   ;;  %v2592_v36 = vld [vmem:[%s3360_s5 + $0x204] ss:$16 sps:$4 sm:$0xff]  }
 0x123   :  { %v2282_v40 = vpop.f32.mrb[13].mxu1  ;;  %1919 = vmatprep.subr.bf16.mxu0 %v2589_v33 }
 0x124   :  { %v2283_v42 = vadd.f32 %v2282_v40, %v2281_v38  ;;  %v2284_v43 = vpop.f32.mrb[14].mxu1  ;;  %1920 = vmatpush1.bf16.msra.mxu0 %v2587_v35 }
 0x125   :  { %v2285_v44 = vpop.f32.mrb[15].mxu1  ;;  %1942 = vmatprep.subr.bf16.mxu0 %v2595_v37 }
 0x126   :  { %v910_v45 = vadd.f32 %v2283_v42, %v2255_v16  ;;  %v2286_v46 = vadd.f32 %v2285_v44, %v2284_v43  ;;  %v2538_v16 = vld [vmem:[%s3360_s5 + $0xe4] ss:$16 sps:$4 sm:$0xff]   ;;  %v2590_v44 = vld [vmem:[%s3360_s5 + $0x200] ss:$16 sps:$4 sm:$0xff]  }
 0x128   :  { %v913_v47 = vadd.f32 %v2286_v46, %v2258_v21  ;;  %v2548_v21 = vld [vmem:[%s3360_s5 + $0x120] ss:$16 sps:$4 sm:$0xff]   ;;  %v2598_v46 = vld [vmem:[%s3360_s5 + $0x224] ss:$16 sps:$4 sm:$0xff]  }
 0x12a   :  { %v925_v49 = vpack.c.bf16 %v913_v47, %v910_v45  ;;  %v2593_v45 = vld [vmem:[%s3360_s5 + $0x208] ss:$16 sps:$4 sm:$0xff]   ;;  %v2601_v47 = vld [vmem:[%s3360_s5 + $0x22c] ss:$16 sps:$4 sm:$0xff]  }
 0x12c   :  { %v1097_v0 = vsel %vm1089_vm3, %v925_v49, 0 }
 0x155   :  { %v799_v50 = vpop.f32.mrb[0].mxu0 }
 0x156   :  { %v801_v51 = vpop.f32.mrb[1].mxu0 }
 0x157   :  { %v803_v52 = vpop.f32.mrb[2].mxu0 }
 0x158   :  { %v920_v53 = vpack.c.bf16 %v803_v52, %v799_v50  ;;  %v805_v54 = vpop.f32.mrb[3].mxu0  ;;  %v2596_v50 = vld [vmem:[%s3360_s5 + $0x220] ss:$16 sps:$4 sm:$0xff]  }
 0x159   :  { %v921_v55 = vpack.c.bf16 %v805_v54, %v801_v51  ;;  %v2599_v51 = vld [vmem:[%s3360_s5 + $0x228] ss:$16 sps:$4 sm:$0xff]   ;;  %v2607_v54 = vld [vmem:[%s3360_s5 + $0x24c] ss:$16 sps:$4 sm:$0xff]  }
 0x15b   :  { %1099 = vmatprep.subr.bf16.mxu1 %v921_v55 }
 0x15c   :  { %1100 = vmatpush1.bf16.msra.mxu1 %v920_v53  ;;  %v2604_v53 = vld [vmem:[%s3360_s5 + $0x244] ss:$16 sps:$4 sm:$0xff]  }
 0x15d   :  { %v809_v56 = vpop.f32.mrb[4].mxu0 }
 0x15e   :  { %v811_v57 = vpop.f32.mrb[5].mxu0 }
 0x15f   :  { %v813_v58 = vpop.f32.mrb[6].mxu0 }
 0x160   :  { %v923_v59 = vpack.c.bf16 %v813_v58, %v809_v56  ;;  %v815_v60 = vpop.f32.mrb[7].mxu0 }
 0x161   :  { %v924_v61 = vpack.c.bf16 %v815_v60, %v811_v57  ;;  %v2605_v60 = vld [vmem:[%s3360_s5 + $0x248] ss:$16 sps:$4 sm:$0xff]  }
 0x162   :  { %v1091_v62 = vsel %vm1089_vm3, %v923_v59, 0  ;;  %v2602_v59 = vld [vmem:[%s3360_s5 + $0x240] ss:$16 sps:$4 sm:$0xff]  }
 0x163   :  { %2130 = vmatprep.subr.msk.bf16.mxu1 %vm1089_vm3, %v924_v61  ;;  %v2610_v61 = vld [vmem:[%s3360_s5 + $0x264] ss:$16 sps:$4 sm:$0xff]  }
 0x164   :  { %1102 = vmatpush1.bf16.msra.mxu1 %v1091_v62  ;;  %v2613_v62 = vld [vmem:[%s3360_s5 + $0x26c] ss:$16 sps:$4 sm:$0xff]  }
 0x165   :  { %2300 = vmatprep.subr.bf16.mxu1 %v922_v39 }
 0x167   :  { %2131 = vmatmul.mubr.msk.bf16.vlgmr.msra.gmra.mrb[16].mxu1 %vm1082_vm4, %v2492_v63 }
 0x168   :  { %2301 = vmatpush3.bf16.msra.mxu1 %v922_v39  ;;  %1141 = vmatprep.mubr.bf16.mxu1 %v2639_v48 }
 0x169   :  { %2344 = vmatprep.subr.msk.bf16.mxu1 %vm1089_vm3, %v925_v49 }
 0x16c   :  { %2303 = vmatpush3.bf16.msra.mxu1 %v1097_v0  ;;  %v2608_v0 = vld [vmem:[%s3360_s5 + $0x260] ss:$16 sps:$4 sm:$0xff]  }
 0x16d   :  { %1783 = vmatprep.subr.bf16.mxu1 %v2496_v1  ;;  %v2611_v1 = vld [vmem:[%s3360_s5 + $0x268] ss:$16 sps:$4 sm:$0xff]  }
 0x16f   :  { %2132 = vmatmul.mubr.msk.bf16.gmra.mrb[20].mxu1 %vm1082_vm4, %v2493_v2 }
 0x170   :  { %2304 = vmatprep.mubr.msk.bf16.mxu1 %vm1082_vm4, %v2492_v63 }
 0x177   :  { %2305 = vmatmul.mubr.msk.bf16.vlgmr.msra.gmra.mrb[24].mxu1 %vm1082_vm4, %v2493_v2 }
 0x178   :  { %1784 = vmatpush1.bf16.msra.mxu1 %v2494_v3  ;;  %v2616_v3 = vld [vmem:[%s3360_s5 + $0x284] ss:$16 sps:$4 sm:$0xff]  }
 0x179   :  { %1785 = vmatprep.subr.bf16.mxu1 %v2502_v4  ;;  %v2619_v4 = vld [vmem:[%s3360_s5 + $0x28c] ss:$16 sps:$4 sm:$0xff]  }
 0x17c   :  { %1786 = vmatpush1.bf16.msra.mxu1 %v2500_v5 }
 0x17d   :  { %1787 = vmatprep.subr.bf16.mxu1 %v2508_v6 }
 0x180   :  { %1788 = vmatpush1.bf16.msra.mxu1 %v2506_v7 }
 0x181   :  { %1789 = vmatprep.subr.bf16.mxu1 %v2514_v8 }
 0x184   :  { %1790 = vmatpush1.bf16.msra.mxu1 %v2512_v9  ;;  %v2614_v9 = vld [vmem:[%s3360_s5 + $0x280] ss:$16 sps:$4 sm:$0xff]  }
 0x185   :  { %1791 = vmatprep.subr.bf16.mxu1 %v2520_v10  ;;  %v2617_v10 = vld [vmem:[%s3360_s5 + $0x288] ss:$16 sps:$4 sm:$0xff]  }
 0x188   :  { %1792 = vmatpush1.bf16.msra.mxu1 %v2518_v11  ;;  %v2622_v11 = vld [vmem:[%s3360_s5 + $0x2a4] ss:$16 sps:$4 sm:$0xff]  }
 0x189   :  { %1793 = vmatprep.subr.bf16.mxu1 %v2526_v12  ;;  %v2625_v12 = vld [vmem:[%s3360_s5 + $0x2ac] ss:$16 sps:$4 sm:$0xff]  }
 0x18c   :  { %1794 = vmatpush1.bf16.msra.mxu1 %v2524_v13  ;;  %v2620_v13 = vld [vmem:[%s3360_s5 + $0x2a0] ss:$16 sps:$4 sm:$0xff]  }
 0x18d   :  { %1795 = vmatprep.subr.bf16.mxu1 %v2532_v14  ;;  %v2623_v14 = vld [vmem:[%s3360_s5 + $0x2a8] ss:$16 sps:$4 sm:$0xff]  }
 0x190   :  { %1796 = vmatpush1.bf16.msra.mxu1 %v2530_v15  ;;  %v2628_v15 = vld [vmem:[%s3360_s5 + $0x2c4] ss:$16 sps:$4 sm:$0xff]  }
 0x191   :  { %1797 = vmatprep.subr.bf16.mxu1 %v2538_v16  ;;  %v2631_v16 = vld [vmem:[%s3360_s5 + $0x2cc] ss:$16 sps:$4 sm:$0xff]  }
 0x194   :  { %1798 = vmatpush1.bf16.msra.mxu1 %v2536_v17  ;;  %v2626_v17 = vld [vmem:[%s3360_s5 + $0x2c0] ss:$16 sps:$4 sm:$0xff]  }
 0x195   :  { %1799 = vmatprep.subr.bf16.mxu1 %v2544_v18  ;;  %v2629_v18 = vld [vmem:[%s3360_s5 + $0x2c8] ss:$16 sps:$4 sm:$0xff]  }
 0x198   :  { %1800 = vmatpush1.bf16.msra.mxu1 %v2542_v19  ;;  %v2634_v19 = vld [vmem:[%s3360_s5 + $0x2e4] ss:$16 sps:$4 sm:$0xff]  }
 0x199   :  { %1801 = vmatprep.subr.bf16.mxu1 %v2550_v20  ;;  %v2637_v20 = vld [vmem:[%s3360_s5 + $0x2ec] ss:$16 sps:$4 sm:$0xff]  }
 0x19c   :  { %1802 = vmatpush1.bf16.msra.mxu1 %v2548_v21  ;;  %v2632_v21 = vld [vmem:[%s3360_s5 + $0x2e0] ss:$16 sps:$4 sm:$0xff]  }
 0x19d   :  { %1803 = vmatprep.subr.bf16.mxu1 %v2556_v22  ;;  %v2635_v22 = vld [vmem:[%s3360_s5 + $0x2e8] ss:$16 sps:$4 sm:$0xff]  }
 0x1a0   :  { %1804 = vmatpush1.bf16.msra.mxu1 %v2554_v23 }
 0x1a1   :  { %1805 = vmatprep.subr.bf16.mxu1 %v2562_v24 }
 0x1a4   :  { %1806 = vmatpush1.bf16.msra.mxu1 %v2560_v25 }
 0x1a5   :  { %1807 = vmatprep.subr.bf16.mxu1 %v2568_v26 }
 0x1a8   :  { %1808 = vmatpush1.bf16.msra.mxu1 %v2566_v27 }
 0x1a9   :  { %1809 = vmatprep.subr.bf16.mxu1 %v2574_v28 }
 0x1ac   :  { %1810 = vmatpush1.bf16.msra.mxu1 %v2572_v29 }
 0x1ad   :  { %1811 = vmatprep.subr.bf16.mxu1 %v2580_v30 }
 0x1b0   :  { %1812 = vmatpush1.bf16.msra.mxu1 %v2578_v31 }
 0x1b1   :  { %1813 = vmatprep.subr.bf16.mxu1 %v2586_v32 }
 0x1b4   :  { %1814 = vmatpush1.bf16.msra.mxu1 %v2584_v34 }
 0x1b5   :  { %1836 = vmatprep.subr.bf16.mxu1 %v2592_v36 }
 0x23a   :  { %v1133_v38 = vpop.f32.mrb[16].mxu1 }
 0x23b   :  { %v1135_v39 = vpop.f32.mrb[17].mxu1 }
 0x23c   :  { %v1137_v40 = vpop.f32.mrb[18].mxu1 }
 0x23d   :  { %v1201_v41 = vpack.c.bf16 %v1137_v40, %v1133_v38  ;;  %v1139_v42 = vpop.f32.mrb[19].mxu1 }
 0x23e   :  { %v1202_v43 = vpack.c.bf16 %v1139_v42, %v1135_v39 }
 0x240   :  { %1815 = vmatprep.mubr.bf16.mxu1 %v1202_v43  ;;  %1921 = vmatprep.mubr.bf16.mxu0 %v1202_v43 }
 0x241   :  { %1816 = vmatmul.mubr.bf16.vlgmr.msra.gmra.mrb[28].mxu1 %v1201_v41  ;;  %1922 = vmatmul.mubr.bf16.vlgmr.msra.gmra.mrb[8].mxu0 %v1201_v41 }
 0x242   :  { %1837 = vmatpush1.bf16.msra.mxu1 %v2590_v44  ;;  %1943 = vmatpush1.bf16.msra.mxu0 %v2593_v45  ;;  %v1143_v49 = vpop.f32.mrb[20].mxu1 }
 0x243   :  { %v1145_v52 = vpop.f32.mrb[21].mxu1  ;;  %1838 = vmatprep.subr.bf16.mxu1 %v2598_v46  ;;  %1944 = vmatprep.subr.bf16.mxu0 %v2601_v47 }
 0x244   :  { %v1147_v55 = vpop.f32.mrb[22].mxu1 }
 0x245   :  { %v1204_v56 = vpack.c.bf16 %v1147_v55, %v1143_v49  ;;  %v1149_v57 = vpop.f32.mrb[23].mxu1 }
 0x246   :  { %v1205_v58 = vpack.c.bf16 %v1149_v57, %v1145_v52  ;;  %1839 = vmatpush1.bf16.msra.mxu1 %v2596_v50  ;;  %1945 = vmatpush1.bf16.msra.mxu0 %v2599_v51 }
 0x247   :  { %1840 = vmatprep.subr.bf16.mxu1 %v2604_v53  ;;  %1946 = vmatprep.subr.bf16.mxu0 %v2607_v54 }
 0x248   :  { %1825 = vmatprep.mubr.bf16.mxu1 %v1205_v58  ;;  %1931 = vmatprep.mubr.bf16.mxu0 %v1205_v58 }
 0x249   :  { %1826 = vmatmul.mubr.bf16.gmra.mrb[32].mxu1 %v1204_v56  ;;  %1932 = vmatmul.mubr.bf16.gmra.mrb[12].mxu0 %v1204_v56 }
 0x24a   :  { %1841 = vmatpush1.bf16.msra.mxu1 %v2602_v59  ;;  %1947 = vmatpush1.bf16.msra.mxu0 %v2605_v60  ;;  %v2306_v63 = vpop.f32.mrb[24].mxu1 }
 0x24b   :  { %v1186_v2 = vpop.f32.mrb[25].mxu1  ;;  %1842 = vmatprep.subr.bf16.mxu1 %v2610_v61  ;;  %1948 = vmatprep.subr.bf16.mxu0 %v2613_v62 }
 0x24c   :  { %v2307_v5 = vpop.f32.mrb[26].mxu1  ;;  %1868 = vmatprep.mubr.bf16.mxu1 %v2639_v48  ;;  %1974 = vmatprep.mubr.bf16.mxu0 %v2639_v48 }
 0x24d   :  { %v1206_v6 = vpack.c.bf16 %v2307_v5, %v2306_v63  ;;  %v1189_v7 = vpop.f32.mrb[27].mxu1 }
 0x24e   :  { %v1203_v8 = vpack.c.bf16 %v1189_v7, %v1186_v2  ;;  %1843 = vmatpush1.bf16.msra.mxu1 %v2608_v0  ;;  %1949 = vmatpush1.bf16.msra.mxu0 %v2611_v1 }
 0x24f   :  { %1844 = vmatprep.subr.bf16.mxu1 %v2616_v3  ;;  %1950 = vmatprep.subr.bf16.mxu0 %v2619_v4 }
 0x252   :  { %1845 = vmatpush1.bf16.msra.mxu1 %v2614_v9  ;;  %1951 = vmatpush1.bf16.msra.mxu0 %v2617_v10 }
 0x253   :  { %1846 = vmatprep.subr.bf16.mxu1 %v2622_v11  ;;  %1952 = vmatprep.subr.bf16.mxu0 %v2625_v12 }
 0x256   :  { %1847 = vmatpush1.bf16.msra.mxu1 %v2620_v13  ;;  %1953 = vmatpush1.bf16.msra.mxu0 %v2623_v14 }
 0x257   :  { %1848 = vmatprep.subr.bf16.mxu1 %v2628_v15  ;;  %1954 = vmatprep.subr.bf16.mxu0 %v2631_v16 }
 0x25a   :  { %1849 = vmatpush1.bf16.msra.mxu1 %v2626_v17  ;;  %1955 = vmatpush1.bf16.msra.mxu0 %v2629_v18 }
 0x25b   :  { %1850 = vmatprep.subr.bf16.mxu1 %v2634_v19  ;;  %1956 = vmatprep.subr.bf16.mxu0 %v2637_v20 }
 0x25e   :  { %1851 = vmatpush1.bf16.msra.mxu1 %v2632_v21  ;;  %1957 = vmatpush1.bf16.msra.mxu0 %v2635_v22 }
 0x261   :  { %1869 = vmatmul.mubr.bf16.vlgmr.msra.gmra.mrb[28].mxu1 %v1203_v8  ;;  %1975 = vmatmul.mubr.bf16.vlgmr.msra.gmra.mrb[8].mxu0 %v1203_v8 }
 0x262   :  { %1878 = vmatprep.mubr.bf16.mxu1 %v2639_v48  ;;  %1984 = vmatprep.mubr.bf16.mxu0 %v2639_v48 }
 0x269   :  { %1879 = vmatmul.mubr.bf16.gmra.mrb[32].mxu1 %v1206_v6  ;;  %1985 = vmatmul.mubr.bf16.gmra.mrb[12].mxu0 %v1206_v6 }
 0x334   :  { %v1870_v23 = vpop.f32.mrb[28].mxu1  ;;  %v1976_v24 = vpop.f32.mrb[8].mxu0 }
 0x335   :  { %1995 = vst [vmem:[%s3361_s6] sm:$0xff] %v1870_v23  ;;  %1997 = vst [vmem:[%s3361_s6 + $0x10] sm:$0xff] %v1976_v24  ;;  %v1872_v25 = vpop.f32.mrb[29].mxu1  ;;  %v1978_v26 = vpop.f32.mrb[9].mxu0 }
 0x336   :  { %1996 = vst [vmem:[%s3361_s6 + $0x8] sm:$0xff] %v1872_v25  ;;  %1998 = vst [vmem:[%s3361_s6 + $0x18] sm:$0xff] %v1978_v26  ;;  %v1874_v48 = vpop.f32.mrb[30].mxu1  ;;  %v1980_v27 = vpop.f32.mrb[10].mxu0 }
 0x337   :  { %1999 = vst [vmem:[%s3361_s6 + $0x20] sm:$0xff] %v1874_v48  ;;  %2001 = vst [vmem:[%s3361_s6 + $0x30] sm:$0xff] %v1980_v27  ;;  %v1876_v28 = vpop.f32.mrb[31].mxu1  ;;  %v1982_v29 = vpop.f32.mrb[11].mxu0 }
 0x338   :  { %2000 = vst [vmem:[%s3361_s6 + $0x28] sm:$0xff] %v1876_v28  ;;  %2002 = vst [vmem:[%s3361_s6 + $0x38] sm:$0xff] %v1982_v29 }
 0x33c   :  { %v1880_v30 = vpop.f32.mrb[32].mxu1  ;;  %v1986_v31 = vpop.f32.mrb[12].mxu0 }
 0x33d   :  { %2003 = vst [vmem:[%s3361_s6 + $0x40] sm:$0xff] %v1880_v30  ;;  %2005 = vst [vmem:[%s3361_s6 + $0x50] sm:$0xff] %v1986_v31  ;;  %v1882_v32 = vpop.f32.mrb[33].mxu1  ;;  %v1988_v33 = vpop.f32.mrb[13].mxu0 }
 0x33e   :  { %2004 = vst [vmem:[%s3361_s6 + $0x48] sm:$0xff] %v1882_v32  ;;  %2006 = vst [vmem:[%s3361_s6 + $0x58] sm:$0xff] %v1988_v33  ;;  %v1884_v34 = vpop.f32.mrb[34].mxu1  ;;  %v1990_v35 = vpop.f32.mrb[14].mxu0 }
 0x33f   :  { %2007 = vst [vmem:[%s3361_s6 + $0x60] sm:$0xf] %v1884_v34  ;;  %2009 = vst [vmem:[%s3361_s6 + $0x70] sm:$0xf] %v1990_v35  ;;  %v1886_v36 = vpop.f32.mrb[35].mxu1  ;;  %v1992_v37 = vpop.f32.mrb[15].mxu0 }
 0x340   :  { %2008 = vst [vmem:[%s3361_s6 + $0x68] sm:$0xf] %v1886_v36  ;;  %2010 = vst [vmem:[%s3361_s6 + $0x78] sm:$0xf] %v1992_v37 }

</bundles_post_ra>
